<compile_context>
chip_gen: v6e
topology: v6e:2x2x1
jax: 0.10.0
libtpu: 0.0.40
codegen_flags: <defaults>
</compile_context>

<pallas_src>
import functools

import jax
import jax.numpy as jnp
from jax.experimental import pallas as pl
from jax.experimental.pallas import tpu as pltpu


def _focus_kernel(x_ref, w_ref, b_ref, o_ref):
    # x_ref: (1, K, TS) bf16 | w_ref: (C2, K) bf16 | b_ref: (C2, 1) f32
    # o_ref: (1, C2, TS) out dtype
    acc = jnp.dot(
        w_ref[...], x_ref[0], preferred_element_type=jnp.float32
    )  # (C2, TS) f32
    o_ref[0] = (acc + b_ref[...]).astype(o_ref.dtype)


def _select_spatial_tile(S, ts, n_batch, bytes_per_col):
    """Pick the spatial (lane) tile.

    Returns (ts_eff, s_pad, needs_pad).  Preference order:
      (a) a single full-S tile,
      (b) a multiple-of-128 tile that divides S exactly (no pad / no slice),
      (c) pad + post-slice fallback.
    The tile is capped so the double-buffered in+out blocks stay < ~10 MiB
    (below every chip's default scoped-VMEM limit), and N == 1 forces >= 2
    tiles so a dual-TensorCore (v7x) chip can split the work.
    """
    budget = 10 * 1024 * 1024
    ts_cap = max(128, (budget // (2 * bytes_per_col)) // 128 * 128)
    ts_req = max(128, (min(ts, ts_cap) // 128) * 128)
    if n_batch == 1 and S >= 256:
        ts_req = min(ts_req, max(128, (S // 2) // 128 * 128))
    if S <= ts_req:
        return S, S, False
    for mult in range(ts_req // 128, 0, -1):
        t = mult * 128
        if S % t == 0:
            return t, S, False
    s_pad = pl.cdiv(S, ts_req) * ts_req
    return ts_req, s_pad, True


@functools.partial(
    jax.jit, static_argnames=("ts", "compute_dtype", "out_dtype")
)
def focus_forward(x, weight, bias, *, ts=16384, compute_dtype=jnp.bfloat16,
                  out_dtype=None):
    """Focus forward.

    x:      (N, C1, H, W)      float32, NCHW (PyTorch convention); H, W even
    weight: (C2, 4*C1, 1, 1)   float32 (PyTorch Conv2d weight layout)
    bias:   (C2,)              float32
    out_dtype: None -> x.dtype (matches PyTorch); jnp.bfloat16 halves the
               output HBM stream (biggest win on v5e).
    returns (N, C2, H//2, W//2) NCHW.
    """
    N, C1, H, W = x.shape
    assert H % 2 == 0 and W % 2 == 0, "Focus requires even H and W"
    C2 = weight.shape[0]
    Ho, Wo = H // 2, W // 2
    K = 4 * C1
    S = Ho * Wo
    odt = jnp.dtype(out_dtype) if out_dtype is not None else x.dtype

    # --- single fused XLA rearrange: space-to-depth + channel flatten + cast.
    # axes after reshape: (N, C1, Ho, ph, Wo, pw); transpose to
    # (N, pw, ph, C1, Ho, Wo) so that k = (pw*2 + ph)*C1 + c1 matches the
    # PyTorch concat order [::2,::2], [1::2,::2], [::2,1::2], [1::2,1::2].
    xr = x.reshape(N, C1, Ho, 2, Wo, 2)
    xr = jnp.transpose(xr, (0, 5, 3, 1, 2, 4)).astype(compute_dtype)
    xr = xr.reshape(N, K, S)

    w2 = weight.reshape(C2, K).astype(compute_dtype)   # (C2, K) resident
    b2 = bias.reshape(C2, 1).astype(jnp.float32)        # (C2, 1) f32 bias

    in_itm = jnp.dtype(compute_dtype).itemsize
    out_itm = jnp.dtype(odt).itemsize
    bytes_per_col = K * in_itm + C2 * out_itm
    ts_eff, s_pad, needs_pad = _select_spatial_tile(S, ts, N, bytes_per_col)
    if needs_pad:
        xr = jnp.pad(xr, ((0, 0), (0, 0), (0, s_pad - S)))

    grid = (N, s_pad // ts_eff)

    cost = pl.CostEstimate(
        flops=2 * N * S * K * C2,
        transcendentals=0,
        bytes_accessed=(N * K * S * in_itm + C2 * K * in_itm + C2 * 4
                        + N * C2 * S * out_itm),
    )

    out = pl.pallas_call(
        _focus_kernel,
        out_shape=jax.ShapeDtypeStruct((N, C2, s_pad), odt),
        grid_spec=pltpu.PrefetchScalarGridSpec(
            num_scalar_prefetch=0,
            grid=grid,
            in_specs=[
                pl.BlockSpec((1, K, ts_eff), lambda n, s: (n, 0, s)),
                pl.BlockSpec((C2, K), lambda n, s: (0, 0)),   # resident weight
                pl.BlockSpec((C2, 1), lambda n, s: (0, 0)),   # resident bias
            ],
            out_specs=pl.BlockSpec((1, C2, ts_eff), lambda n, s: (n, 0, s)),
        ),
        compiler_params=pltpu.CompilerParams(
            dimension_semantics=("parallel", "parallel"),
        ),
        cost_estimate=cost,
    )(xr, w2, b2)

    if needs_pad:
        out = out[:, :, :S]
    # (N, C2, Ho*Wo) -> (N, C2, Ho, Wo): free reshape, already NCHW.
    return out.reshape(N, C2, Ho, Wo)


def _reference(x, weight, bias):
    """Plain-JAX (f32) reference mirroring the PyTorch forward."""
    x_cat = jnp.concatenate(
        [
            x[..., ::2, ::2],
            x[..., 1::2, ::2],
            x[..., ::2, 1::2],
            x[..., 1::2, 1::2],
        ],
        axis=1,
    )
    y = jax.lax.conv_general_dilated(
        x_cat,
        weight,
        window_strides=(1, 1),
        padding="VALID",
        dimension_numbers=("NCHW", "OIHW", "NCHW"),
    )
    return y + bias.reshape(1, -1, 1, 1)


if __name__ == "__main__":
    # Small shapes consistent with the module: c1=4, c2=8, k=1, s=1.
    N, C1, H, W = 2, 4, 16, 16
    C2 = 8

    key = jax.random.PRNGKey(0)
    kx, kw, kb = jax.random.split(key, 3)

    x = jax.random.normal(kx, (N, C1, H, W), dtype=jnp.float32)
    weight = jax.random.normal(kw, (C2, 4 * C1, 1, 1), dtype=jnp.float32) * 0.1
    bias = jax.random.normal(kb, (C2,), dtype=jnp.float32) * 0.1

    y = focus_forward(x, weight, bias)
    y = jax.block_until_ready(y)

    y_ref = _reference(x, weight, bias)
    assert y.shape == (N, C2, H // 2, W // 2), y.shape
    # bf16 compute path vs f32 reference -> allow ~1e-2-level deltas.
    assert jnp.allclose(y, y_ref, atol=5e-2, rtol=5e-2), (
        float(jnp.max(jnp.abs(y - y_ref)))
    )

    print("KERNEL_OK")
</pallas_src>

<mosaic_0001>
module attributes {stable_mosaic.version = 11 : i64} {
  func.func @_focus_kernel(%arg0: i32, %arg1: i32, %arg2: memref<1x16x64xbf16, #tpu.memory_space<vmem>>, %arg3: memref<8x16xbf16, #tpu.memory_space<vmem>>, %arg4: memref<8x1xf32, #tpu.memory_space<vmem>>, %arg5: memref<1x8x64xf32, #tpu.memory_space<vmem>>) attributes {dimension_semantics = [#tpu.dimension_semantics<parallel>, #tpu.dimension_semantics<parallel>], iteration_bounds = array<i64: 2, 1>, scalar_prefetch = 0 : i64, scratch_operands = 0 : i64, tpu.core_type = #tpu.core_type<tc>, window_params = [{transform_indices = @transform_0, window_bounds = array<i64: 1, 16, 64>}, {pipeline_mode = #tpu.pipeline_mode<synchronous>, transform_indices = @transform_1, window_bounds = array<i64: 8, 16>}, {pipeline_mode = #tpu.pipeline_mode<synchronous>, transform_indices = @transform_2, window_bounds = array<i64: 8, 1>}, {transform_indices = @transform_3, window_bounds = array<i64: 1, 8, 64>}]} {
    %c0 = arith.constant 0 : index
    %c0_0 = arith.constant 0 : index
    %0 = vector.load %arg3[%c0, %c0_0] : memref<8x16xbf16, #tpu.memory_space<vmem>>, vector<8x16xbf16>
    %c0_1 = arith.constant 0 : index
    %c0_2 = arith.constant 0 : index
    %c0_3 = arith.constant 0 : index
    %1 = vector.load %arg2[%c0_1, %c0_2, %c0_3] : memref<1x16x64xbf16, #tpu.memory_space<vmem>>, vector<1x16x64xbf16>
    %2 = vector.shape_cast %1 : vector<1x16x64xbf16> to vector<16x64xbf16>
    %cst = arith.constant dense<0.000000e+00> : vector<8x64xf32>
    %3 = tpu.matmul %0, %2, %cst {dimension_numbers = #tpu.dot_dimension_numbers<[1], [0], [0], [1], [0, 0, 1, 1], [], []>} : vector<8x16xbf16>, vector<16x64xbf16>, vector<8x64xf32> -> vector<8x64xf32>
    %c0_4 = arith.constant 0 : index
    %c0_5 = arith.constant 0 : index
    %4 = vector.load %arg4[%c0_4, %c0_5] : memref<8x1xf32, #tpu.memory_space<vmem>>, vector<8x1xf32>
    %5 = vector.broadcast %4 : vector<8x1xf32> to vector<8x64xf32>
    %6 = arith.addf %3, %5 : vector<8x64xf32>
    %c0_6 = arith.constant 0 : index
    %c0_7 = arith.constant 0 : index
    %c0_8 = arith.constant 0 : index
    %7 = vector.load %arg5[%c0_6, %c0_7, %c0_8] : memref<1x8x64xf32, #tpu.memory_space<vmem>>, vector<1x8x64xf32>
    %8 = vector.shape_cast %7 : vector<1x8x64xf32> to vector<8x64xf32>
    %9 = vector.shape_cast %6 : vector<8x64xf32> to vector<1x8x64xf32>
    tpu.vector_store %arg5[%c0_6, %c0_7, %c0_8], %9 {strides = array<i32>} : memref<1x8x64xf32, #tpu.memory_space<vmem>>, vector<1x8x64xf32>,
    return
  }
  func.func @transform_0(%arg0: i32, %arg1: i32) -> (i32, i32, i32) {
    %c0_i32 = arith.constant 0 : i32
    %c0_i32_0 = arith.constant 0 : i32
    return %arg0, %c0_i32, %arg1 : i32, i32, i32
  }
  func.func @transform_1(%arg0: i32, %arg1: i32) -> (i32, i32) {
    %c0_i32 = arith.constant 0 : i32
    %c0_i32_0 = arith.constant 0 : i32
    %c0_i32_1 = arith.constant 0 : i32
    return %c0_i32, %c0_i32_0 : i32, i32
  }
  func.func @transform_2(%arg0: i32, %arg1: i32) -> (i32, i32) {
    %c0_i32 = arith.constant 0 : i32
    %c0_i32_0 = arith.constant 0 : i32
    %c0_i32_1 = arith.constant 0 : i32
    return %c0_i32, %c0_i32_0 : i32, i32
  }
  func.func @transform_3(%arg0: i32, %arg1: i32) -> (i32, i32, i32) {
    %c0_i32 = arith.constant 0 : i32
    %c0_i32_0 = arith.constant 0 : i32
    return %arg0, %c0_i32, %arg1 : i32, i32, i32
  }
}

</mosaic_0001>

<bundles_post_ra>
// kernel: focus_forward.1
= control target key start
LH: loop header
LB: loop body
LE: loop exit
PB: predicated region body
PF: predicated region fallthrough
CT: control target
= control target key end

     0   :  { %s436_s12 = smov 0   ;;  %s438_s13 = smov 0   ;;  %s475_s0 = inlined_call_operand.vmem [shape: bf16[2,16,64], index: 0, kind: input, shape index: {}]   ;;  %s476_s1 = inlined_call_operand.vmem [shape: bf16[8,16], index: 1, kind: input, shape index: {}]   ;;  %s477_s2 = inlined_call_operand.vmem [shape: f32[8,1], index: 2, kind: input, shape index: {}]   ;;  %s478_s3 = inlined_call_operand.vmem [shape: f32[2,8,64], index: 3, kind: output, shape index: {}]  }
   0x1   :  { %s440_s14 = smov 0  }
   0x2 LB: > { %s25_s15 = sadd.s32 1, %s407_s13  ;;  %p343_p0 = scmp.ge.s32.totalorder %s411_s14, 1  ;;  %s411_s14 = sphi %s440_s14, %s13_s14   ;;  %s407_s13 = sphi %s438_s13, %s480_s13   ;;  %s403_s12 = sphi %s436_s12, %s479_s12  }
   0x3   : > { %p27_p1 = scmp.ge.s32.totalorder %s25_s15, 2  ;;  %p156_p2 = scmp.lt.s32.totalorder %s411_s14, 3 }
   0x5   : > { %s482_s15 = smov (%p27_p1, %s25_s15), 0  ;;  %p157_p3 = pnand %p343_p0, %p156_p2 }
   0x6   : > { %p185_p4 = scmp.lt.s32.totalorder (!%p157_p3), %s403_s12, 1 }
   0x7   : > { %160 = sbr.rel (%p157_p3) target bundleno = 218 (0xda), region = 32 }
   0xc   : > { %v413_v0 = vmov 0.0   ;;  %vm414_vm0 = vmmov 0   ;;  %v204_v1 = vld [vmem:[%s477_s2] sm:$0xff]  ;;  %s484_s12 = smov (!%p185_p4, %s403_s12), 1  ;;  %v415_v2 = vmov 0   ;;  %vm216_vm1 = vcmask 130048  }
   0xd   : > { %354 = vmatprep.subr.bf16.mxu0 %v413_v0  ;;  %356 = vmatprep.mubr.msk.bf16.mxu0 %vm414_vm0, %v413_v0  ;;  %s351_s18 = sshll.u32 %s484_s12, 3  ;;  %v201_v4 = vld [vmem:[%s476_s1] sm:$0xf]  ;;  %vm260_vm2 = vcmask 523264  }
   0xe   : > { %387 = vset.pattern.permute.xlu0 %v415_v2  ;;  %s192_s21 = scalar_lea.vmem %s475_s0, %s351_s18  ;;  %s199_s26 = scalar_lea.vmem %s478_s3, %s351_s18 }
   0xf   : > { %207 = vperm.xlu0 %387, %v204_v1   ;;  %v388_v3 = vld [vmem:[%s192_s21] sm:$0xff]  }
  0x10   : > { %355 = vmatpush3.bf16.msra.mxu0 %v388_v3 }
  0x13   : > { %357 = vmatmul.mubr.msk.bf16.vlgmr.msra.gmra.mxu0 %vm216_vm1, %v201_v4 }
  0x8a   : > { %v208_v5 = vpop.permute.xlu0 %207 }
  0xd3   : > { %v254_v6 = vpop.f32.mrf.mxu0 }
  0xd4   : > { %v255_v7 = vadd.f32 %v254_v6, %v208_v5 }
  0xd5   : > { %v358_v8 = vpop.f32.mrf.mxu0 }
  0xd6   : > { %261 = vst.msk [vmem:[%s199_s26] sm:$0xff] %vm260_vm2, %v255_v7 }
  0xd7   : > { %v257_v9 = vpop.f32.mrf.mxu0 }
  0xd9   : > { %v359_v10 = vpop.f32.mrf.mxu0 }
  0xda PF: > { %s13_s14 = sadd.s32 1, %s411_s14   ;;  %s479_s12 = smov %s407_s13 }
  0xdb   : > { %p10_p5 = scmp.ge.s32.totalorder %s13_s14, 4   ;;  %s480_s13 = smov %s482_s15 }
  0xdd   :  { %12 = sbr.rel (!%p10_p5) target bundleno = 2 (0x2), region = 62 }

</bundles_post_ra>
